<compile_context>
chip_gen: v6e
topology: v6e:2x2x1
jax: 0.10.0
libtpu: 0.0.40
codegen_flags: <defaults>
</compile_context>

<pallas_src>
import functools
import math

import jax
import jax.numpy as jnp
from jax.experimental import pallas as pl
from jax.experimental.pallas import tpu as pltpu


def _round_up(x, m):
    return ((x + m - 1) // m) * m


# ----------------------------- Pallas kernels ------------------------------


def _sgconv_fused_kernel(x_ref, w_ref, adj_ref, bias_ref, o_ref, *,
                         num_layers, has_bias):
    """Whole SGConv forward in VMEM: out = adj^L @ (x @ W) (+ bias)."""
    # support = x @ W  (bf16 operands, f32 accumulation on the MXU)
    h = jnp.dot(x_ref[...], w_ref[...], preferred_element_type=jnp.float32)
    adj = adj_ref[...]
    # Propagate: h <- adj @ h, num_layers times (== adj^L @ (x @ W)).
    for _ in range(num_layers):
        h = jnp.dot(adj, h.astype(adj.dtype), preferred_element_type=jnp.float32)
    if has_bias:
        h = h + bias_ref[...].astype(jnp.float32)
    o_ref[...] = h.astype(o_ref.dtype)


def _matmul_kernel(a_ref, b_ref, o_ref, acc_ref):
    # grid = (M//tm, N//tn, K//tk); K is the reduction ("arbitrary") axis.
    @pl.when(pl.program_id(2) == 0)
    def _():
        acc_ref[...] = jnp.zeros_like(acc_ref)

    acc_ref[...] += jnp.dot(
        a_ref[...], b_ref[...], preferred_element_type=jnp.float32
    )

    @pl.when(pl.program_id(2) == pl.num_programs(2) - 1)
    def _():
        o_ref[...] = acc_ref[...].astype(o_ref.dtype)


def _matmul_bias_kernel(a_ref, b_ref, bias_ref, o_ref, acc_ref):
    @pl.when(pl.program_id(2) == 0)
    def _():
        acc_ref[...] = jnp.zeros_like(acc_ref)

    acc_ref[...] += jnp.dot(
        a_ref[...], b_ref[...], preferred_element_type=jnp.float32
    )

    @pl.when(pl.program_id(2) == pl.num_programs(2) - 1)
    def _():
        # bias_ref is a (1, tn) tile; broadcasts over the tm rows.
        o_ref[...] = (acc_ref[...] + bias_ref[...].astype(jnp.float32)).astype(
            o_ref.dtype
        )


# ------------------------------ host wrappers -------------------------------


def _sgconv_fused(x, w, adj, bias, *, num_layers, compute_dtype, out_dtype):
    """Single pallas_call for the whole forward when it fits in VMEM."""
    n, f_in = x.shape
    f_out = w.shape[1]
    isz = jnp.dtype(compute_dtype).itemsize
    osz = jnp.dtype(out_dtype).itemsize
    has_bias = bias is not None

    xc = x.astype(compute_dtype)
    wc = w.astype(compute_dtype)
    adjc = adj.astype(compute_dtype)
    bias2d = (bias.reshape(1, f_out).astype(jnp.float32) if has_bias
              else jnp.zeros((1, f_out), jnp.float32))

    # inputs + output + f32 intermediate h + its compute-dtype copy.
    est = ((n * f_in + f_in * f_out + n * n) * isz
           + f_out * 4 + n * f_out * (4 + 4 + isz))
    vmem_limit = int(min(max(4 * est, 32 << 20), 48 << 20))  # v7x-safe cap
    flops = 2 * n * f_in * f_out + num_layers * 2 * n * n * f_out
    bytes_accessed = ((n * f_in + f_in * f_out + n * n) * isz
                      + f_out * 4 + n * f_out * osz)

    vmem = pltpu.MemorySpace.VMEM
    return pl.pallas_call(
        functools.partial(_sgconv_fused_kernel, num_layers=num_layers,
                          has_bias=has_bias),
        out_shape=jax.ShapeDtypeStruct((n, f_out), out_dtype),
        in_specs=[pl.BlockSpec(memory_space=vmem)] * 4,
        out_specs=pl.BlockSpec(memory_space=vmem),
        compiler_params=pltpu.CompilerParams(vmem_limit_bytes=vmem_limit),
        cost_estimate=pl.CostEstimate(
            flops=flops, transcendentals=0, bytes_accessed=bytes_accessed),
    )(xc, wc, adjc, bias2d)


def _pallas_matmul(a, b, bias=None, *, tm=256, tn=256, tk=512,
                   compute_dtype=jnp.bfloat16, out_dtype=None):
    """C = a @ b (+ bias) with a tiled MXU kernel (bf16 in, f32 accumulate)."""
    M, K = a.shape
    K2, N = b.shape
    assert K == K2, (a.shape, b.shape)
    if out_dtype is None:
        out_dtype = a.dtype

    a = a.astype(compute_dtype)
    b = b.astype(compute_dtype)

    # (8,128)-aligned tiles, >=256-wide where the problem allows it so the
    # 256-wide MXUs on v6e/v7x stay filled and output stores are lane-dense.
    tm = min(tm, _round_up(M, 8))
    tn = min(tn, _round_up(N, 128))
    tk = min(tk, _round_up(K, 128))

    # Zero-pad to tile multiples (handles non-multiple-of-128 node counts).
    Mp, Np, Kp = _round_up(M, tm), _round_up(N, tn), _round_up(K, tk)
    if (Mp, Kp) != (M, K):
        a = jnp.pad(a, ((0, Mp - M), (0, Kp - K)))
    if (Kp, Np) != (K, N):
        b = jnp.pad(b, ((0, Kp - K), (0, Np - N)))

    grid = (Mp // tm, Np // tn, Kp // tk)
    a_spec = pl.BlockSpec((tm, tk), lambda i, j, k: (i, k))
    b_spec = pl.BlockSpec((tk, tn), lambda i, j, k: (k, j))
    o_spec = pl.BlockSpec((tm, tn), lambda i, j, k: (i, j))
    scratch = [pltpu.VMEM((tm, tn), jnp.float32)]

    in_isz = jnp.dtype(compute_dtype).itemsize
    out_isz = jnp.dtype(out_dtype).itemsize
    # Double-buffered A/B/out tiles + f32 accumulator, with 2x headroom so
    # 512-class tiles don't trip the default scoped-VMEM cap; capped at 48 MiB
    # so the same config stays legal on v7x's 64 MiB physical VMEM.
    need = (2 * (tm * tk + tk * tn) * in_isz + 2 * tm * tn * out_isz
            + tm * tn * 4 + 2 * tn * 4)
    vmem_limit = int(min(max(2 * need, 32 << 20), 48 << 20))

    cparams = pltpu.CompilerParams(
        dimension_semantics=("parallel", "parallel", "arbitrary"),
        vmem_limit_bytes=vmem_limit,
    )
    cost = pl.CostEstimate(
        flops=2 * Mp * Np * Kp,
        transcendentals=0,
        bytes_accessed=(Mp * Kp + Kp * Np) * in_isz + Mp * Np * out_isz,
    )

    if bias is None:
        out = pl.pallas_call(
            _matmul_kernel,
            out_shape=jax.ShapeDtypeStruct((Mp, Np), out_dtype),
            grid_spec=pltpu.PrefetchScalarGridSpec(
                num_scalar_prefetch=0,
                grid=grid,
                in_specs=[a_spec, b_spec],
                out_specs=o_spec,
                scratch_shapes=scratch,
            ),
            compiler_params=cparams,
            cost_estimate=cost,
        )(a, b)
    else:
        bias2d = bias.reshape(1, N).astype(jnp.float32)
        if Np != N:
            bias2d = jnp.pad(bias2d, ((0, 0), (0, Np - N)))
        bias_spec = pl.BlockSpec((1, tn), lambda i, j, k: (0, j))
        out = pl.pallas_call(
            _matmul_bias_kernel,
            out_shape=jax.ShapeDtypeStruct((Mp, Np), out_dtype),
            grid_spec=pltpu.PrefetchScalarGridSpec(
                num_scalar_prefetch=0,
                grid=grid,
                in_specs=[a_spec, b_spec, bias_spec],
                out_specs=o_spec,
                scratch_shapes=scratch,
            ),
            compiler_params=cparams,
            cost_estimate=cost,
        )(a, b, bias2d)

    if (Mp, Np) != (M, N):
        out = out[:M, :N]
    return out


class SGConvPallas:
    """JAX/Pallas port of the PyTorch SGConv module (forward only)."""

    # If the fused working set fits in this many bytes, run the whole forward
    # as a single pallas_call; larger graphs use the tiled per-matmul path.
    _FUSE_VMEM_BYTES = 12 << 20  # conservative across v5e / v6e / v7x

    def __init__(self, in_features, out_features, num_layers, bias=True,
                 key=None, compute_dtype=jnp.bfloat16, use_fused=None):
        assert num_layers >= 1, "num_layers must be >= 1 (matches the torch code)"
        self.in_features = in_features
        self.out_features = out_features
        self.num_layers = num_layers
        self.compute_dtype = compute_dtype
        self.use_fused = use_fused  # None = auto-select by working-set size
        if key is None:
            key = jax.random.PRNGKey(0)
        kw, kb = jax.random.split(key)
        stdv = 1.0 / math.sqrt(out_features)
        self.weight = jax.random.uniform(
            kw, (in_features, out_features), jnp.float32, -stdv, stdv
        )
        self.bias = (
            jax.random.uniform(kb, (out_features,), jnp.float32, -stdv, stdv)
            if bias
            else None
        )

    def _fused_bytes(self, n):
        isz = jnp.dtype(self.compute_dtype).itemsize
        f_in, f_out = self.in_features, self.out_features
        return ((n * f_in + f_in * f_out + n * n) * isz
                + f_out * 4 + n * f_out * (4 + 4 + isz))

    @functools.partial(jax.jit, static_argnums=0)
    def __call__(self, x, adj):
        n = adj.shape[0]
        out_dtype = x.dtype

        fuse = self.use_fused
        if fuse is None:
            fuse = self._fused_bytes(n) <= self._FUSE_VMEM_BYTES

        if fuse:
            return _sgconv_fused(
                x, self.weight, adj, self.bias,
                num_layers=self.num_layers,
                compute_dtype=self.compute_dtype,
                out_dtype=out_dtype,
            )

        # Tiled fallback: out = adj^L @ (x @ W) + bias computed by propagating
        # the [N, F_out] support through adj (associativity); bias is fused
        # into the final propagation step's epilogue.
        h = _pallas_matmul(
            x, self.weight,
            compute_dtype=self.compute_dtype, out_dtype=jnp.float32)
        for layer in range(self.num_layers):
            last = layer == self.num_layers - 1
            h = _pallas_matmul(
                adj, h,
                bias=self.bias if last else None,
                compute_dtype=self.compute_dtype,
                out_dtype=out_dtype if last else jnp.float32)
        return h


# ----------------------------------- main -----------------------------------

if __name__ == "__main__":
    key = jax.random.PRNGKey(0)
    k_x, k_adj, k_param = jax.random.split(key, 3)

    num_nodes, in_features, out_features, num_layers = 128, 64, 128, 3

    x = jax.random.normal(k_x, (num_nodes, in_features), jnp.float32)
    adj_raw = jax.random.uniform(k_adj, (num_nodes, num_nodes), jnp.float32)
    # Row-normalize so repeated propagation stays well-conditioned.
    adj = adj_raw / jnp.sum(adj_raw, axis=1, keepdims=True)

    model = SGConvPallas(in_features, out_features, num_layers, bias=True,
                         key=k_param)

    # f32 reference, exactly the PyTorch forward's formulation (adj^L @ (xW)+b).
    support_ref = x @ model.weight
    a_ref = jnp.eye(num_nodes, dtype=adj.dtype)
    for _ in range(num_layers):
        a_ref = a_ref @ adj
    out_ref = a_ref @ support_ref + model.bias

    # Fused single-kernel path (auto-selected: the whole problem fits VMEM).
    out_fused = jax.block_until_ready(model(x, adj))

    # Tiled multi-kernel path (forced), exercising the general matmul kernels.
    model_tiled = SGConvPallas(in_features, out_features, num_layers, bias=True,
                               key=k_param, use_fused=False)
    out_tiled = jax.block_until_ready(model_tiled(x, adj))

    # bf16 operands with f32 accumulation => looser tolerance than pure f32.
    tol = dict(atol=3e-2, rtol=3e-2)
    assert out_fused.shape == (num_nodes, out_features)
    assert out_tiled.shape == (num_nodes, out_features)
    assert jnp.allclose(out_fused, out_ref, **tol)
    assert jnp.allclose(out_tiled, out_ref, **tol)

    print("KERNEL_OK")
</pallas_src>

<mosaic_0001>
module attributes {stable_mosaic.version = 11 : i64} {
  func.func @_sgconv_fused_kernel(%arg0: memref<128x64xbf16, #tpu.memory_space<vmem>>, %arg1: memref<64x128xbf16, #tpu.memory_space<vmem>>, %arg2: memref<128x128xbf16, #tpu.memory_space<vmem>>, %arg3: memref<1x128xf32, #tpu.memory_space<vmem>>, %arg4: memref<128x128xf32, #tpu.memory_space<vmem>>) attributes {dimension_semantics = [], scalar_prefetch = 0 : i64, scratch_operands = 0 : i64, tpu.core_type = #tpu.core_type<tc>} {
    %c0 = arith.constant 0 : index
    %c0_0 = arith.constant 0 : index
    %0 = vector.load %arg0[%c0, %c0_0] : memref<128x64xbf16, #tpu.memory_space<vmem>>, vector<128x64xbf16>
    %c0_1 = arith.constant 0 : index
    %c0_2 = arith.constant 0 : index
    %1 = vector.load %arg1[%c0_1, %c0_2] : memref<64x128xbf16, #tpu.memory_space<vmem>>, vector<64x128xbf16>
    %cst = arith.constant dense<0.000000e+00> : vector<128x128xf32>
    %2 = tpu.matmul %0, %1, %cst {dimension_numbers = #tpu.dot_dimension_numbers<[1], [0], [0], [1], [0, 0, 1, 1], [], []>} : vector<128x64xbf16>, vector<64x128xbf16>, vector<128x128xf32> -> vector<128x128xf32>
    %c0_3 = arith.constant 0 : index
    %c0_4 = arith.constant 0 : index
    %3 = vector.load %arg2[%c0_3, %c0_4] : memref<128x128xbf16, #tpu.memory_space<vmem>>, vector<128x128xbf16>
    %4 = arith.truncf %2 : vector<128x128xf32> to vector<128x128xbf16>
    %cst_5 = arith.constant dense<0.000000e+00> : vector<128x128xf32>
    %5 = tpu.matmul %3, %4, %cst_5 {dimension_numbers = #tpu.dot_dimension_numbers<[1], [0], [0], [1], [0, 0, 1, 1], [], []>} : vector<128x128xbf16>, vector<128x128xbf16>, vector<128x128xf32> -> vector<128x128xf32>
    %6 = arith.truncf %5 : vector<128x128xf32> to vector<128x128xbf16>
    %cst_6 = arith.constant dense<0.000000e+00> : vector<128x128xf32>
    %7 = tpu.matmul %3, %6, %cst_6 {dimension_numbers = #tpu.dot_dimension_numbers<[1], [0], [0], [1], [0, 0, 1, 1], [], []>} : vector<128x128xbf16>, vector<128x128xbf16>, vector<128x128xf32> -> vector<128x128xf32>
    %8 = arith.truncf %7 : vector<128x128xf32> to vector<128x128xbf16>
    %cst_7 = arith.constant dense<0.000000e+00> : vector<128x128xf32>
    %9 = tpu.matmul %3, %8, %cst_7 {dimension_numbers = #tpu.dot_dimension_numbers<[1], [0], [0], [1], [0, 0, 1, 1], [], []>} : vector<128x128xbf16>, vector<128x128xbf16>, vector<128x128xf32> -> vector<128x128xf32>
    %c0_8 = arith.constant 0 : index
    %c0_9 = arith.constant 0 : index
    %10 = vector.load %arg3[%c0_8, %c0_9] : memref<1x128xf32, #tpu.memory_space<vmem>>, vector<1x128xf32>
    %11 = vector.broadcast %10 : vector<1x128xf32> to vector<128x128xf32>
    %12 = arith.addf %9, %11 : vector<128x128xf32>
    %c0_10 = arith.constant 0 : index
    %c0_11 = arith.constant 0 : index
    %13 = vector.load %arg4[%c0_10, %c0_11] : memref<128x128xf32, #tpu.memory_space<vmem>>, vector<128x128xf32>
    tpu.vector_store %arg4[%c0_10, %c0_11], %12 {strides = array<i32>} : memref<128x128xf32, #tpu.memory_space<vmem>>, vector<128x128xf32>,
    return
  }
}

</mosaic_0001>

<bundles_post_ra>
// kernel: a_call__.1
= control target key start
LH: loop header
LB: loop body
LE: loop exit
PB: predicated region body
PF: predicated region fallthrough
CT: control target
= control target key end

     0   :  { %vm107_vm0 = vcmask 523264   ;;  %s1054_s0 = inlined_call_operand.vmem [shape: bf16[128,64], index: 0, kind: input, shape index: {}]   ;;  %s1055_s1 = inlined_call_operand.vmem [shape: bf16[64,128], index: 1, kind: input, shape index: {}]   ;;  %s1056_s2 = inlined_call_operand.vmem [shape: bf16[128,128], index: 2, kind: input, shape index: {}]   ;;  %s1057_s3 = inlined_call_operand.vmem [shape: f32[1,128], index: 3, kind: input, shape index: {}]   ;;  %s1058_s4 = inlined_call_operand.hbm [shape: f32[128,128], index: 4, kind: output, shape index: {}]  }
   0x1   :  { %v875_v0 = vld [vmem:[%s1055_s1 + $0x18] sm:$0xff]   ;;  %v876_v1 = vld [vmem:[%s1055_s1 + $0x10] sm:$0xff]   ;;  %v877_v2 = vld [vmem:[%s1055_s1 + $0x8] sm:$0xff]  }
   0x2   :  { %736 = vmatprep.subr.bf16.mxu0 %v875_v0  ;;  %v879_v3 = vld [vmem:[%s1054_s0] sm:$0xff]   ;;  %v880_v5 = vld [vmem:[%s1054_s0 + $0x8] sm:$0xff]   ;;  %v881_v6 = vld [vmem:[%s1054_s0 + $0x10] sm:$0xff]  }
   0x3   :  { %737 = vmatpush3.bf16.msra.mxu0 %v875_v0  ;;  %744 = vmatprep.mubr.msk.bf16.mxu0 %vm107_vm0, %v879_v3  ;;  %v878_v4 = vld [vmem:[%s1055_s1] sm:$0xff]  }
   0x4   :  { %738 = vmatprep.subr.bf16.mxu0 %v876_v1 }
   0x7   :  { %739 = vmatpush3.bf16.msra.mxu0 %v876_v1 }
   0x8   :  { %740 = vmatprep.subr.bf16.mxu0 %v877_v2 }
   0xb   :  { %741 = vmatpush3.bf16.msra.mxu0 %v877_v2 }
   0xc   :  { %742 = vmatprep.subr.bf16.mxu0 %v878_v4 }
   0xf   :  { %743 = vmatpush3.bf16.msra.mxu0 %v878_v4 }
  0x10   :  { %9 = vsyncpa [#allocation3], 0  ;;  %v882_v7 = vld [vmem:[%s1054_s0 + $0x18] sm:$0xff]   ;;  %v883_v8 = vld [vmem:[%s1054_s0 + $0x20] sm:$0xff]  }
  0x11   :  { %v884_v9 = vld [vmem:[%s1054_s0 + $0x28] sm:$0xff]   ;;  %v885_v10 = vld [vmem:[%s1054_s0 + $0x30] sm:$0xff]   ;;  %v886_v11 = vld [vmem:[%s1054_s0 + $0x38] sm:$0xff]  }
  0x12   :  { %745 = vmatmul.mubr.msk.bf16.vlgmr.msra.gmra.mxu0 %vm107_vm0, %v880_v5  ;;  %v992_v12 = vld [vmem:[%s1056_s2] sm:$0xff]   ;;  %v999_v37 = vld [vmem:[%s1056_s2 + $0x8] sm:$0xff]   ;;  %v889_v38 = vld [vmem:[%s1056_s2 + $0x10] sm:$0xff]  }
  0x13   :  { %748 = vmatprep.mubr.msk.bf16.mxu0 %vm107_vm0, %v881_v6  ;;  %776 = vmatprep.mubr.bf16.mxu1 %v992_v12  ;;  %v1008_v39 = vld [vmem:[%s1056_s2 + $0x18] sm:$0xff]   ;;  %v1013_v40 = vld [vmem:[%s1056_s2 + $0x20] sm:$0xff]   ;;  %v1020_v41 = vld [vmem:[%s1056_s2 + $0x28] sm:$0xff]  }
  0x14   :  { %v1025_v42 = vld [vmem:[%s1056_s2 + $0x30] sm:$0xff]   ;;  %v1032_v43 = vld [vmem:[%s1056_s2 + $0x38] sm:$0xff]  }
  0x1a   :  { %749 = vmatmul.mubr.msk.bf16.gmra.mxu0 %vm107_vm0, %v882_v7 }
  0x1b   :  { %752 = vmatprep.mubr.msk.bf16.mxu0 %vm107_vm0, %v883_v8 }
  0x22   :  { %753 = vmatmul.mubr.msk.bf16.gmra.mxu0 %vm107_vm0, %v884_v9 }
  0x23   :  { %756 = vmatprep.mubr.msk.bf16.mxu0 %vm107_vm0, %v885_v10 }
  0x2a   :  { %757 = vmatmul.mubr.msk.bf16.gmra.mxu0 %vm107_vm0, %v886_v11 }
  0x2b   :  { %808 = vmatprep.mubr.bf16.mxu0 %v992_v12 }
  0xd2   :  { %v746_v13 = vpop.f32.mrf.mxu0 }
  0xd4   :  { %v166_v14 = vpop.f32.mrf.mxu0 }
  0xd6   :  { %v747_v15 = vpop.f32.mrf.mxu0 }
  0xd7   :  { %v246_v35 = vpack.c.bf16 %v747_v15, %v746_v13 }
  0xd8   :  { %v169_v16 = vpop.f32.mrf.mxu0 }
  0xd9   :  { %v245_v36 = vpack.c.bf16 %v169_v16, %v166_v14 }
  0xda   :  { %v750_v17 = vpop.f32.mrf.mxu0 }
  0xdc   :  { %v182_v18 = vpop.f32.mrf.mxu0 }
  0xde   :  { %v751_v19 = vpop.f32.mrf.mxu0 }
  0xdf   :  { %v248_v33 = vpack.c.bf16 %v751_v19, %v750_v17 }
  0xe0   :  { %v185_v20 = vpop.f32.mrf.mxu0 }
  0xe1   :  { %v247_v34 = vpack.c.bf16 %v185_v20, %v182_v18 }
  0xe2   :  { %v754_v21 = vpop.f32.mrf.mxu0 }
  0xe4   :  { %v198_v22 = vpop.f32.mrf.mxu0 }
  0xe6   :  { %v755_v23 = vpop.f32.mrf.mxu0 }
  0xe7   :  { %v250_v31 = vpack.c.bf16 %v755_v23, %v754_v21 }
  0xe8   :  { %v201_v24 = vpop.f32.mrf.mxu0 }
  0xe9   :  { %v249_v32 = vpack.c.bf16 %v201_v24, %v198_v22 }
  0xea   :  { %v758_v25 = vpop.f32.mrf.mxu0 }
  0xec   :  { %v214_v26 = vpop.f32.mrf.mxu0 }
  0xee   :  { %v759_v27 = vpop.f32.mrf.mxu0 }
  0xef   :  { %v252_v28 = vpack.c.bf16 %v759_v27, %v758_v25 }
  0xf0   :  { %v217_v29 = vpop.f32.mrf.mxu0 }
  0xf1   :  { %v251_v30 = vpack.c.bf16 %v217_v29, %v214_v26  ;;  %760 = vmatprep.subr.bf16.mxu1 %v252_v28 }
  0xf2   :  { %761 = vmatpush3.bf16.msra.mxu1 %v252_v28  ;;  %v675_v28 = vld [vmem:[%s1057_s3] ss:$0 sm:$0xff]  ;;  %s917_s3 = smov [#allocation2]  }
  0xf3   :  { %762 = vmatprep.subr.bf16.mxu1 %v251_v30  ;;  %s636_s28 = sshll.u32 %s917_s3, 4  ;;  %s637_s28 = int_to_ptr.vmem [resolvable:$true] %s636_s28 }
  0xf4   :  { %s895_s29 = scalar_lea.vmem %s637_s28, 2048  ;;  %p900_p1 = scmp.lt.s32.totalorder %s637_s28, %s637_s28 }
  0xf5   :  { %p896_p0 = scmp.ne.s32.totalorder %s637_s28, %s895_s29  ;;  %p901_p2 = scmp.lt.s32.totalorder %s895_s29, %s895_s29 }
  0xf6   :  { %763 = vmatpush3.bf16.msra.mxu1 %v251_v30 }
  0xf7   :  { %764 = vmatprep.subr.bf16.mxu1 %v250_v31  ;;  %p902_p3 = por %p901_p2, %p900_p1 }
  0xf9   :  { %p903_p4 = pnand %p902_p3, %p896_p0 }
  0xfa   :  { %765 = vmatpush3.bf16.msra.mxu1 %v250_v31 }
  0xfb   :  { %766 = vmatprep.subr.bf16.mxu1 %v249_v32 }
  0xfe   :  { %767 = vmatpush3.bf16.msra.mxu1 %v249_v32 }
  0xff   :  { %768 = vmatprep.subr.bf16.mxu1 %v248_v33 }
 0x102   :  { %769 = vmatpush3.bf16.msra.mxu1 %v248_v33 }
 0x103   :  { %770 = vmatprep.subr.bf16.mxu1 %v247_v34 }
 0x106   :  { %771 = vmatpush3.bf16.msra.mxu1 %v247_v34 }
 0x107   :  { %772 = vmatprep.subr.bf16.mxu1 %v246_v35 }
 0x10a   :  { %773 = vmatpush3.bf16.msra.mxu1 %v246_v35 }
 0x10b   :  { %774 = vmatprep.subr.bf16.mxu1 %v245_v36 }
 0x10e   :  { %775 = vmatpush3.bf16.msra.mxu1 %v245_v36 }
 0x111   :  { %777 = vmatmul.mubr.bf16.vlgmr.msra.gmra.mxu1 %v999_v37 }
 0x112   :  { %780 = vmatprep.mubr.bf16.mxu1 %v889_v38 }
 0x119   :  { %781 = vmatmul.mubr.bf16.gmra.mxu1 %v1008_v39 }
 0x11a   :  { %784 = vmatprep.mubr.bf16.mxu1 %v1013_v40 }
 0x121   :  { %785 = vmatmul.mubr.bf16.gmra.mxu1 %v1020_v41 }
 0x122   :  { %788 = vmatprep.mubr.bf16.mxu1 %v1025_v42 }
 0x129   :  { %789 = vmatmul.mubr.bf16.gmra.mxu1 %v1032_v43 }
 0x12a   :  { %844 = vmatprep.mubr.bf16.mxu1 %v889_v38 }
 0x1d1   :  { %v778_v44 = vpop.f32.mrf.mxu1 }
 0x1d3   :  { %v335_v45 = vpop.f32.mrf.mxu1 }
 0x1d5   :  { %v779_v46 = vpop.f32.mrf.mxu1 }
 0x1d6   :  { %v399_v2 = vpack.c.bf16 %v779_v46, %v778_v44 }
 0x1d7   :  { %v338_v47 = vpop.f32.mrf.mxu1 }
 0x1d8   :  { %v398_v3 = vpack.c.bf16 %v338_v47, %v335_v45 }
 0x1d9   :  { %v782_v48 = vpop.f32.mrf.mxu1 }
 0x1db   :  { %v351_v49 = vpop.f32.mrf.mxu1 }
 0x1dd   :  { %v783_v50 = vpop.f32.mrf.mxu1 }
 0x1de   :  { %v401_v0 = vpack.c.bf16 %v783_v50, %v782_v48 }
 0x1df   :  { %v354_v51 = vpop.f32.mrf.mxu1 }
 0x1e0   :  { %v400_v1 = vpack.c.bf16 %v354_v51, %v351_v49 }
 0x1e1   :  { %v786_v52 = vpop.f32.mrf.mxu1 }
 0x1e3   :  { %v367_v53 = vpop.f32.mrf.mxu1 }
 0x1e5   :  { %v787_v54 = vpop.f32.mrf.mxu1 }
 0x1e6   :  { %v403_v62 = vpack.c.bf16 %v787_v54, %v786_v52 }
 0x1e7   :  { %v370_v55 = vpop.f32.mrf.mxu1 }
 0x1e8   :  { %v402_v63 = vpack.c.bf16 %v370_v55, %v367_v53 }
 0x1e9   :  { %v790_v56 = vpop.f32.mrf.mxu1 }
 0x1eb   :  { %v383_v57 = vpop.f32.mrf.mxu1 }
 0x1ed   :  { %v791_v58 = vpop.f32.mrf.mxu1 }
 0x1ee   :  { %v405_v59 = vpack.c.bf16 %v791_v58, %v790_v56 }
 0x1ef   :  { %v386_v60 = vpop.f32.mrf.mxu1 }
 0x1f0   :  { %v404_v61 = vpack.c.bf16 %v386_v60, %v383_v57  ;;  %792 = vmatprep.subr.bf16.mxu0 %v405_v59 }
 0x1f1   :  { %793 = vmatpush3.bf16.msra.mxu0 %v405_v59 }
 0x1f2   :  { %794 = vmatprep.subr.bf16.mxu0 %v404_v61 }
 0x1f5   :  { %795 = vmatpush3.bf16.msra.mxu0 %v404_v61 }
 0x1f6   :  { %796 = vmatprep.subr.bf16.mxu0 %v403_v62 }
 0x1f9   :  { %797 = vmatpush3.bf16.msra.mxu0 %v403_v62 }
 0x1fa   :  { %798 = vmatprep.subr.bf16.mxu0 %v402_v63 }
 0x1fd   :  { %799 = vmatpush3.bf16.msra.mxu0 %v402_v63 }
 0x1fe   :  { %800 = vmatprep.subr.bf16.mxu0 %v401_v0 }
 0x201   :  { %801 = vmatpush3.bf16.msra.mxu0 %v401_v0 }
 0x202   :  { %802 = vmatprep.subr.bf16.mxu0 %v400_v1 }
 0x205   :  { %803 = vmatpush3.bf16.msra.mxu0 %v400_v1 }
 0x206   :  { %804 = vmatprep.subr.bf16.mxu0 %v399_v2 }
 0x209   :  { %805 = vmatpush3.bf16.msra.mxu0 %v399_v2 }
 0x20a   :  { %806 = vmatprep.subr.bf16.mxu0 %v398_v3 }
 0x20d   :  { %807 = vmatpush3.bf16.msra.mxu0 %v398_v3 }
 0x210   :  { %809 = vmatmul.mubr.bf16.vlgmr.msra.gmra.mxu0 %v999_v37 }
 0x211   :  { %812 = vmatprep.mubr.bf16.mxu0 %v889_v38 }
 0x218   :  { %813 = vmatmul.mubr.bf16.gmra.mxu0 %v1008_v39 }
 0x219   :  { %816 = vmatprep.mubr.bf16.mxu0 %v1013_v40 }
 0x220   :  { %817 = vmatmul.mubr.bf16.gmra.mxu0 %v1020_v41 }
 0x221   :  { %820 = vmatprep.mubr.bf16.mxu0 %v1025_v42 }
 0x228   :  { %821 = vmatmul.mubr.bf16.gmra.mxu0 %v1032_v43 }
 0x229   :  { %840 = vmatprep.mubr.bf16.mxu0 %v992_v12 }
 0x2d0   :  { %v810_v4 = vpop.f32.mrf.mxu0 }
 0x2d2   :  { %v440_v5 = vpop.f32.mrf.mxu0 }
 0x2d4   :  { %v811_v6 = vpop.f32.mrf.mxu0 }
 0x2d5   :  { %v504_v26 = vpack.c.bf16 %v811_v6, %v810_v4 }
 0x2d6   :  { %v443_v7 = vpop.f32.mrf.mxu0 }
 0x2d7   :  { %v503_v27 = vpack.c.bf16 %v443_v7, %v440_v5 }
 0x2d8   :  { %v814_v8 = vpop.f32.mrf.mxu0 }
 0x2da   :  { %v456_v9 = vpop.f32.mrf.mxu0 }
 0x2dc   :  { %v815_v10 = vpop.f32.mrf.mxu0 }
 0x2dd   :  { %v506_v24 = vpack.c.bf16 %v815_v10, %v814_v8 }
 0x2de   :  { %v459_v11 = vpop.f32.mrf.mxu0 }
 0x2df   :  { %v505_v25 = vpack.c.bf16 %v459_v11, %v456_v9 }
 0x2e0   :  { %v818_v13 = vpop.f32.mrf.mxu0 }
 0x2e2   :  { %v472_v14 = vpop.f32.mrf.mxu0 }
 0x2e4   :  { %v819_v15 = vpop.f32.mrf.mxu0 }
 0x2e5   :  { %v508_v12 = vpack.c.bf16 %v819_v15, %v818_v13 }
 0x2e6   :  { %v475_v16 = vpop.f32.mrf.mxu0 }
 0x2e7   :  { %v507_v23 = vpack.c.bf16 %v475_v16, %v472_v14 }
 0x2e8   :  { %v822_v17 = vpop.f32.mrf.mxu0 }
 0x2ea   :  { %v488_v18 = vpop.f32.mrf.mxu0 }
 0x2ec   :  { %v823_v19 = vpop.f32.mrf.mxu0 }
 0x2ed   :  { %v510_v20 = vpack.c.bf16 %v823_v19, %v822_v17 }
 0x2ee   :  { %v491_v21 = vpop.f32.mrf.mxu0 }
 0x2ef   :  { %v509_v22 = vpack.c.bf16 %v491_v21, %v488_v18  ;;  %824 = vmatprep.subr.bf16.mxu0 %v510_v20  ;;  %856 = vmatprep.subr.bf16.mxu1 %v510_v20 }
 0x2f0   :  { %825 = vmatpush3.bf16.msra.mxu0 %v510_v20  ;;  %864 = vmatpush3.bf16.msra.mxu1 %v510_v20 }
 0x2f1   :  { %826 = vmatprep.subr.bf16.mxu0 %v509_v22  ;;  %857 = vmatprep.subr.bf16.mxu1 %v509_v22 }
 0x2f4   :  { %827 = vmatpush3.bf16.msra.mxu0 %v509_v22  ;;  %865 = vmatpush3.bf16.msra.mxu1 %v509_v22 }
 0x2f5   :  { %828 = vmatprep.subr.bf16.mxu0 %v508_v12  ;;  %858 = vmatprep.subr.bf16.mxu1 %v508_v12 }
 0x2f8   :  { %829 = vmatpush3.bf16.msra.mxu0 %v508_v12  ;;  %866 = vmatpush3.bf16.msra.mxu1 %v508_v12 }
 0x2f9   :  { %830 = vmatprep.subr.bf16.mxu0 %v507_v23  ;;  %859 = vmatprep.subr.bf16.mxu1 %v507_v23 }
 0x2fc   :  { %831 = vmatpush3.bf16.msra.mxu0 %v507_v23  ;;  %867 = vmatpush3.bf16.msra.mxu1 %v507_v23 }
 0x2fd   :  { %832 = vmatprep.subr.bf16.mxu0 %v506_v24  ;;  %860 = vmatprep.subr.bf16.mxu1 %v506_v24 }
 0x300   :  { %833 = vmatpush3.bf16.msra.mxu0 %v506_v24  ;;  %868 = vmatpush3.bf16.msra.mxu1 %v506_v24 }
 0x301   :  { %834 = vmatprep.subr.bf16.mxu0 %v505_v25  ;;  %861 = vmatprep.subr.bf16.mxu1 %v505_v25 }
 0x304   :  { %835 = vmatpush3.bf16.msra.mxu0 %v505_v25  ;;  %869 = vmatpush3.bf16.msra.mxu1 %v505_v25 }
 0x305   :  { %836 = vmatprep.subr.bf16.mxu0 %v504_v26  ;;  %862 = vmatprep.subr.bf16.mxu1 %v504_v26 }
 0x308   :  { %837 = vmatpush3.bf16.msra.mxu0 %v504_v26  ;;  %870 = vmatpush3.bf16.msra.mxu1 %v504_v26 }
 0x309   :  { %838 = vmatprep.subr.bf16.mxu0 %v503_v27  ;;  %863 = vmatprep.subr.bf16.mxu1 %v503_v27 }
 0x30c   :  { %839 = vmatpush3.bf16.msra.mxu0 %v503_v27  ;;  %871 = vmatpush3.bf16.msra.mxu1 %v503_v27 }
 0x30f   :  { %845 = vmatmul.mubr.bf16.vlgmr.msra.gmra.mxu1 %v1008_v39  ;;  %841 = vmatmul.mubr.bf16.vlgmr.msra.gmra.mxu0 %v999_v37 }
 0x310   :  { %848 = vmatprep.mubr.bf16.mxu1 %v1013_v40 }
 0x317   :  { %849 = vmatmul.mubr.bf16.gmra.mxu1 %v1020_v41 }
 0x318   :  { %852 = vmatprep.mubr.bf16.mxu1 %v1025_v42 }
 0x31f   :  { %853 = vmatmul.mubr.bf16.gmra.mxu1 %v1032_v43 }
 0x3cf   :  { %v846_v29 = vpop.f32.mrf.mxu1  ;;  %v842_v30 = vpop.f32.mrf.mxu0 }
 0x3d0   :  { %v577_v31 = vadd.f32 %v846_v29, %v675_v28  ;;  %v561_v32 = vadd.f32 %v842_v30, %v675_v28 }
 0x3d1   :  { %v568_v33 = vpop.f32.mrf.mxu1  ;;  %v552_v34 = vpop.f32.mrf.mxu0 }
 0x3d2   :  { %621 = vst [vmem:[#allocation2 + $0x30] sm:$0xff] %v577_v31  ;;  %v569_v35 = vadd.f32 %v675_v28, %v568_v33  ;;  %617 = vst [vmem:[#allocation2 + $0x10] sm:$0xff] %v561_v32  ;;  %v553_v36 = vadd.f32 %v675_v28, %v552_v34 }
 0x3d3   :  { %v847_v37 = vpop.f32.mrf.mxu1  ;;  %v843_v38 = vpop.f32.mrf.mxu0 }
 0x3d4   :  { %619 = vst [vmem:[#allocation2 + $0x20] sm:$0xff] %v569_v35  ;;  %v580_v39 = vadd.f32 %v847_v37, %v675_v28  ;;  %615 = vst [vmem:[#allocation2] sm:$0xff] %v553_v36  ;;  %v564_v40 = vadd.f32 %v843_v38, %v675_v28 }
 0x3d5   :  { %v571_v41 = vpop.f32.mrf.mxu1  ;;  %v555_v42 = vpop.f32.mrf.mxu0 }
 0x3d6   :  { %622 = vst [vmem:[#allocation2 + $0x38] sm:$0xff] %v580_v39  ;;  %v572_v43 = vadd.f32 %v675_v28, %v571_v41  ;;  %618 = vst [vmem:[#allocation2 + $0x18] sm:$0xff] %v564_v40  ;;  %v556_v44 = vadd.f32 %v675_v28, %v555_v42 }
 0x3d7   :  { %v850_v45 = vpop.f32.mrf.mxu1 }
 0x3d8   :  { %620 = vst [vmem:[#allocation2 + $0x28] sm:$0xff] %v572_v43  ;;  %v593_v46 = vadd.f32 %v850_v45, %v675_v28  ;;  %616 = vst [vmem:[#allocation2 + $0x8] sm:$0xff] %v556_v44 }
 0x3d9   :  { %v584_v47 = vpop.f32.mrf.mxu1 }
 0x3da   :  { %625 = vst [vmem:[#allocation2 + $0x50] sm:$0xff] %v593_v46  ;;  %v585_v48 = vadd.f32 %v675_v28, %v584_v47 }
 0x3db   :  { %v851_v49 = vpop.f32.mrf.mxu1 }
 0x3dc   :  { %623 = vst [vmem:[#allocation2 + $0x40] sm:$0xff] %v585_v48  ;;  %v596_v50 = vadd.f32 %v851_v49, %v675_v28 }
 0x3dd   :  { %v587_v51 = vpop.f32.mrf.mxu1 }
 0x3de   :  { %626 = vst [vmem:[#allocation2 + $0x58] sm:$0xff] %v596_v50  ;;  %v588_v52 = vadd.f32 %v675_v28, %v587_v51 }
 0x3df   :  { %v854_v53 = vpop.f32.mrf.mxu1 }
 0x3e0   :  { %624 = vst [vmem:[#allocation2 + $0x48] sm:$0xff] %v588_v52  ;;  %v609_v54 = vadd.f32 %v854_v53, %v675_v28 }
 0x3e1   :  { %v600_v55 = vpop.f32.mrf.mxu1 }
 0x3e2   :  { %629 = vst [vmem:[#allocation2 + $0x70] sm:$0xff] %v609_v54  ;;  %v601_v56 = vadd.f32 %v675_v28, %v600_v55 }
 0x3e3   :  { %v855_v57 = vpop.f32.mrf.mxu1 }
 0x3e4   :  { %627 = vst [vmem:[#allocation2 + $0x60] sm:$0xff] %v601_v56  ;;  %v612_v58 = vadd.f32 %v855_v57, %v675_v28 }
 0x3e5   :  { %v603_v59 = vpop.f32.mrf.mxu1 }
 0x3e6   :  { %630 = vst [vmem:[#allocation2 + $0x78] sm:$0xff] %v612_v58  ;;  %v604_v60 = vadd.f32 %v675_v28, %v603_v59 }
 0x3e8   :  { %628 = vst [vmem:[#allocation2 + $0x68] sm:$0xff] %v604_v60 }
 0x3e9   :  { %906 = shalt.err (!%p903_p4)
}
 0x3ea   :  { %s918_s30 = smov 128   ;;  %s919_s1 = smov 8  }
 0x3eb   :  { %642 = dma.vmem_to_hbm [thread:$0]  %s637_s28, 2048, %s1058_s4, [#allocation3], %s918_s30, %s918_s30, %s919_s1  }
 0x3ec   :  { %915 = dma.done.wait [#allocation3], 2048  }
 0x3ed   :  { %916 = vsyncadd [#allocation3], 4294965248 }
 0x3ee   :  { %646 = vsyncpa [#allocation3], 1 }

</bundles_post_ra>
